<compile_context>
chip_gen: v7x
topology: tpu7x:2x2x1
jax: 0.10.0
libtpu: 0.0.40
codegen_flags: <defaults>
</compile_context>

<pallas_src>
import functools

import jax
import jax.numpy as jnp
from jax import lax
from jax.experimental import pallas as pl
from jax.experimental.pallas import tpu as pltpu


def _am_softmax_kernel(cos_ref, lbl_ref, loss_ref, acc_ref, *,
                       scale, margins, batch, block_b):
    """One batch tile: fused cos-margin + log-softmax + NLL partial sum.

    cos_ref : (C, block_b) VMEM   -- classes on sublanes, batch on lanes
    lbl_ref : (1, block_b) int32  -- integer labels (argmax of the one-hot target)
    loss_ref: (1, 1) f32 output   -- mean loss (written on the last tile)
    acc_ref : (1, 1) f32 VMEM scratch -- running sum across tiles
    """
    i = pl.program_id(0)

    @pl.when(i == 0)
    def _():
        acc_ref[...] = jnp.zeros_like(acc_ref)

    lbl = lbl_ref[...]                                        # (1, tB) int32
    num_classes = len(margins)

    # logits[c] = s * cos[c] - (s * m[c]) * (label == c)  -- margin only at label col
    logits = []
    for c in range(num_classes):
        cos_c = cos_ref[pl.ds(c, 1), :].astype(jnp.float32)   # (1, tB)
        is_lbl = (lbl == c).astype(jnp.float32)
        logits.append(scale * cos_c - (scale * margins[c]) * is_lbl)

    # Elementwise (lane-parallel) log-softmax over the statically-unrolled class set.
    lmax = logits[0]
    for lc in logits[1:]:
        lmax = jnp.maximum(lmax, lc)
    sum_exp = jnp.zeros_like(lmax)
    picked = jnp.zeros_like(lmax)
    for c in range(num_classes):
        shifted = logits[c] - lmax
        sum_exp = sum_exp + jnp.exp(shifted)
        picked = picked + jnp.where(lbl == c, shifted, 0.0)

    per_col = jnp.log(sum_exp) - picked                       # (1, tB) = -logp[label]

    # Mask the padded tail of the last batch tile.
    col = lax.broadcasted_iota(jnp.int32, per_col.shape, 1)
    valid = (i * block_b + col) < batch
    per_col = jnp.where(valid, per_col, 0.0)

    acc_ref[...] += jnp.sum(per_col, axis=1, keepdims=True)   # (1, 1)

    @pl.when(i == pl.num_programs(0) - 1)
    def _():
        loss_ref[...] = acc_ref[...] / batch
    # TODO(synk): gamma>0 focal path, 'arc'/'cross_entropy' margins and
    # label_smooth=True soft targets are not exercised by the default config;
    # only the default (cos margin, gamma=0, t=1, one-hot target) path is here.


def am_softmax_loss(cos_theta, target, *, m=(0.5, 0.5), s=30.0, block_b=1024):
    """AM-Softmax forward (cos margin, gamma=0, t=1); `target` is a one-hot (B, C)."""
    B, C = cos_theta.shape
    assert len(m) == C

    # fold_target = target.argmax(dim=1): done once in XLA so the kernel never
    # touches the f32 one-hot (halves kernel HBM bytes).
    labels = jnp.argmax(target, axis=1).astype(jnp.int32)            # (B,)

    # Lane-dense layout: classes on sublanes, batch padded to a multiple of the
    # 128-lane tile.  Tiles are tiny ((C + 1) * tB * 4B), so VMEM is not a
    # constraint even on v7x's 64 MiB; tB stays a multiple of 128 lanes.
    bb = max(128, min(int(block_b), ((B + 127) // 128) * 128))
    bb = (bb // 128) * 128
    nb = pl.cdiv(B, bb)
    b_pad = nb * bb

    cos_t = jnp.pad(jnp.transpose(cos_theta), ((0, 0), (0, b_pad - B)))  # (C, b_pad)
    lbl = jnp.pad(labels, (0, b_pad - B)).reshape(1, b_pad)              # (1, b_pad)

    kernel = functools.partial(
        _am_softmax_kernel,
        scale=float(s),
        margins=tuple(float(v) for v in m),   # module __init__ constant: m / ratio
        batch=int(B),
        block_b=int(bb))

    out = pl.pallas_call(
        kernel,
        out_shape=jax.ShapeDtypeStruct((1, 1), jnp.float32),
        grid_spec=pltpu.PrefetchScalarGridSpec(
            num_scalar_prefetch=0,
            grid=(nb,),
            in_specs=[
                pl.BlockSpec((C, bb), lambda i: (0, i)),
                pl.BlockSpec((1, bb), lambda i: (0, i)),
            ],
            out_specs=pl.BlockSpec((1, 1), lambda i: (0, 0)),
            scratch_shapes=[pltpu.VMEM((1, 1), jnp.float32)],
        ),
        compiler_params=pltpu.CompilerParams(
            dimension_semantics=("arbitrary",)),
    )(cos_t, lbl)
    return out[0, 0]


def am_softmax_loss_ref(cos_theta, target, m_vec, s=30.0):
    """Pure-JAX reference mirroring the PyTorch forward (cos margin, gamma=0, t=1)."""
    fold = jnp.argmax(target, axis=1)
    one_hot = jax.nn.one_hot(fold, cos_theta.shape[1], dtype=jnp.float32)
    logits = s * (cos_theta.astype(jnp.float32) - m_vec * one_hot)
    logp = jax.nn.log_softmax(logits, axis=-1)
    return jnp.mean(jnp.sum(-target * logp, axis=-1))


if __name__ == "__main__":
    key = jax.random.PRNGKey(0)
    num_classes = 2
    # module __init__: m = [0.5 / r for r in ratio], ratio=(1, 1)
    m_vec = (0.5 / 1.0, 0.5 / 1.0)
    s = 30.0

    k_cos, k_lbl, k_cos2, k_lbl2 = jax.random.split(key, 4)

    # Small default-config example (B=8, C=2); exercises tail masking (8 < 128).
    B = 8
    cos_theta = jnp.tanh(jax.random.normal(k_cos, (B, num_classes), jnp.float32))
    labels = jax.random.randint(k_lbl, (B,), 0, num_classes)
    target = jax.nn.one_hot(labels, num_classes, dtype=jnp.float32)

    loss = am_softmax_loss(cos_theta, target, m=m_vec, s=s)
    jax.block_until_ready(loss)
    ref = am_softmax_loss_ref(cos_theta, target, jnp.asarray(m_vec)[None, :], s=s)
    assert jnp.allclose(loss, ref, rtol=1e-5, atol=1e-5), (loss, ref)

    # Multi-tile check: grid accumulation + masked partial last tile (B=300, tB=128).
    B2 = 300
    cos2 = jnp.tanh(jax.random.normal(k_cos2, (B2, num_classes), jnp.float32))
    lbl2 = jax.random.randint(k_lbl2, (B2,), 0, num_classes)
    tgt2 = jax.nn.one_hot(lbl2, num_classes, dtype=jnp.float32)

    loss2 = am_softmax_loss(cos2, tgt2, m=m_vec, s=s, block_b=128)
    jax.block_until_ready(loss2)
    ref2 = am_softmax_loss_ref(cos2, tgt2, jnp.asarray(m_vec)[None, :], s=s)
    assert jnp.allclose(loss2, ref2, rtol=1e-5, atol=1e-5), (loss2, ref2)

    print("KERNEL_OK")
</pallas_src>

<mosaic_0001>
module attributes {stable_mosaic.version = 11 : i64} {
  func.func @_am_softmax_kernel(%arg0: i32, %arg1: memref<2x128xf32, #tpu.memory_space<vmem>>, %arg2: memref<1x128xi32, #tpu.memory_space<vmem>>, %arg3: memref<1x1xf32, #tpu.memory_space<vmem>>, %arg4: memref<1x1xf32, #tpu.memory_space<vmem>>) attributes {dimension_semantics = [#tpu.dimension_semantics<arbitrary>], iteration_bounds = array<i64: 1>, scalar_prefetch = 0 : i64, scratch_operands = 1 : i64, tpu.core_type = #tpu.core_type<tc>, window_params = [{transform_indices = @transform_0, window_bounds = array<i64: 2, 128>}, {transform_indices = @transform_1, window_bounds = array<i64: 1, 128>}, {pipeline_mode = #tpu.pipeline_mode<synchronous>, transform_indices = @transform_2, window_bounds = array<i64: 1, 1>}]} {
    %c0_i32 = arith.constant 0 : i32
    %0 = arith.cmpi eq, %arg0, %c0_i32 : i32
    %1 = arith.extui %0 : i1 to i32
    %c0_i32_0 = arith.constant 0 : i32
    %2 = arith.cmpi ne, %1, %c0_i32_0 : i32
    scf.if %2 {
      %cst_23 = arith.constant 0.000000e+00 : f32
      %61 = vector.broadcast %cst_23 : f32 to vector<1x1xf32>
      %c0_24 = arith.constant 0 : index
      %c0_25 = arith.constant 0 : index
      %62 = vector.load %arg4[%c0_24, %c0_25] : memref<1x1xf32, #tpu.memory_space<vmem>>, vector<1x1xf32>
      tpu.vector_store %arg4[%c0_24, %c0_25], %61 {strides = array<i32>} : memref<1x1xf32, #tpu.memory_space<vmem>>, vector<1x1xf32>,
    } else {
    }
    %c0 = arith.constant 0 : index
    %c0_1 = arith.constant 0 : index
    %3 = vector.load %arg2[%c0, %c0_1] : memref<1x128xi32, #tpu.memory_space<vmem>>, vector<1x128xi32>
    %c0_2 = arith.constant 0 : index
    %c0_3 = arith.constant 0 : index
    %4 = vector.load %arg1[%c0_2, %c0_3] : memref<2x128xf32, #tpu.memory_space<vmem>>, vector<1x128xf32>
    %c0_i32_4 = arith.constant 0 : i32
    %5 = vector.broadcast %c0_i32_4 : i32 to vector<1x128xi32>
    %6 = arith.cmpi eq, %3, %5 : vector<1x128xi32>
    %7 = arith.extui %6 : vector<1x128xi1> to vector<1x128xi32>
    %8 = arith.sitofp %7 : vector<1x128xi32> to vector<1x128xf32>
    %cst = arith.constant 3.000000e+01 : f32
    %9 = vector.broadcast %cst : f32 to vector<1x128xf32>
    %10 = arith.mulf %9, %4 : vector<1x128xf32>
    %cst_5 = arith.constant 1.500000e+01 : f32
    %11 = vector.broadcast %cst_5 : f32 to vector<1x128xf32>
    %12 = arith.mulf %11, %8 : vector<1x128xf32>
    %13 = arith.subf %10, %12 : vector<1x128xf32>
    %c1 = arith.constant 1 : index
    %c0_6 = arith.constant 0 : index
    %14 = vector.load %arg1[%c1, %c0_6] : memref<2x128xf32, #tpu.memory_space<vmem>>, vector<1x128xf32>
    %c1_i32 = arith.constant 1 : i32
    %15 = vector.broadcast %c1_i32 : i32 to vector<1x128xi32>
    %16 = arith.cmpi eq, %3, %15 : vector<1x128xi32>
    %17 = arith.extui %16 : vector<1x128xi1> to vector<1x128xi32>
    %18 = arith.sitofp %17 : vector<1x128xi32> to vector<1x128xf32>
    %cst_7 = arith.constant 3.000000e+01 : f32
    %19 = vector.broadcast %cst_7 : f32 to vector<1x128xf32>
    %20 = arith.mulf %19, %14 : vector<1x128xf32>
    %cst_8 = arith.constant 1.500000e+01 : f32
    %21 = vector.broadcast %cst_8 : f32 to vector<1x128xf32>
    %22 = arith.mulf %21, %18 : vector<1x128xf32>
    %23 = arith.subf %20, %22 : vector<1x128xf32>
    %24 = arith.maximumf %13, %23 : vector<1x128xf32>
    %cst_9 = arith.constant 0.000000e+00 : f32
    %25 = vector.broadcast %cst_9 : f32 to vector<1x128xf32>
    %cst_10 = arith.constant 0.000000e+00 : f32
    %26 = vector.broadcast %cst_10 : f32 to vector<1x128xf32>
    %27 = arith.subf %13, %24 : vector<1x128xf32>
    %28 = math.exp %27 : vector<1x128xf32>
    %29 = arith.addf %25, %28 : vector<1x128xf32>
    %c0_i32_11 = arith.constant 0 : i32
    %30 = vector.broadcast %c0_i32_11 : i32 to vector<1x128xi32>
    %31 = arith.cmpi eq, %3, %30 : vector<1x128xi32>
    %cst_12 = arith.constant 0.000000e+00 : f32
    %32 = vector.broadcast %cst_12 : f32 to vector<1x128xf32>
    %33 = arith.select %31, %27, %32 : vector<1x128xi1>, vector<1x128xf32>
    %34 = arith.addf %26, %33 : vector<1x128xf32>
    %35 = arith.subf %23, %24 : vector<1x128xf32>
    %36 = math.exp %35 : vector<1x128xf32>
    %37 = arith.addf %29, %36 : vector<1x128xf32>
    %c1_i32_13 = arith.constant 1 : i32
    %38 = vector.broadcast %c1_i32_13 : i32 to vector<1x128xi32>
    %39 = arith.cmpi eq, %3, %38 : vector<1x128xi32>
    %cst_14 = arith.constant 0.000000e+00 : f32
    %40 = vector.broadcast %cst_14 : f32 to vector<1x128xf32>
    %41 = arith.select %39, %35, %40 : vector<1x128xi1>, vector<1x128xf32>
    %42 = arith.addf %34, %41 : vector<1x128xf32>
    %43 = math.log %37 : vector<1x128xf32>
    %44 = arith.subf %43, %42 : vector<1x128xf32>
    %45 = tpu.iota {dimensions = array<i32: 1>} : vector<1x128xi32>
    %c128_i32 = arith.constant 128 : i32
    %46 = arith.muli %arg0, %c128_i32 : i32
    %47 = vector.broadcast %46 : i32 to vector<1x128xi32>
    %48 = arith.addi %47, %45 : vector<1x128xi32>
    %c8_i32 = arith.constant 8 : i32
    %49 = vector.broadcast %c8_i32 : i32 to vector<1x128xi32>
    %50 = arith.cmpi slt, %48, %49 : vector<1x128xi32>
    %cst_15 = arith.constant 0.000000e+00 : f32
    %51 = vector.broadcast %cst_15 : f32 to vector<1x128xf32>
    %52 = arith.select %50, %44, %51 : vector<1x128xi1>, vector<1x128xf32>
    %c0_16 = arith.constant 0 : index
    %c0_17 = arith.constant 0 : index
    %53 = vector.load %arg4[%c0_16, %c0_17] : memref<1x1xf32, #tpu.memory_space<vmem>>, vector<1x1xf32>
    %cst_18 = arith.constant dense<0.000000e+00> : vector<1xf32>
    %54 = vector.multi_reduction <add>, %52, %cst_18 [1] : vector<1x128xf32> to vector<1xf32>
    %55 = vector.shape_cast %54 : vector<1xf32> to vector<1x1xf32>
    %56 = arith.addf %53, %55 : vector<1x1xf32>
    %c0_19 = arith.constant 0 : index
    %c0_20 = arith.constant 0 : index
    %57 = vector.load %arg4[%c0_19, %c0_20] : memref<1x1xf32, #tpu.memory_space<vmem>>, vector<1x1xf32>
    tpu.vector_store %arg4[%c0_19, %c0_20], %56 {strides = array<i32>} : memref<1x1xf32, #tpu.memory_space<vmem>>, vector<1x1xf32>,
    %c0_i32_21 = arith.constant 0 : i32
    %58 = arith.cmpi eq, %arg0, %c0_i32_21 : i32
    %59 = arith.extui %58 : i1 to i32
    %c0_i32_22 = arith.constant 0 : i32
    %60 = arith.cmpi ne, %59, %c0_i32_22 : i32
    scf.if %60 {
      %c0_23 = arith.constant 0 : index
      %c0_24 = arith.constant 0 : index
      %61 = vector.load %arg4[%c0_23, %c0_24] : memref<1x1xf32, #tpu.memory_space<vmem>>, vector<1x1xf32>
      %cst_25 = arith.constant 8.000000e+00 : f32
      %62 = vector.broadcast %cst_25 : f32 to vector<1x1xf32>
      %63 = arith.divf %61, %62 : vector<1x1xf32>
      %c0_26 = arith.constant 0 : index
      %c0_27 = arith.constant 0 : index
      %64 = vector.load %arg3[%c0_26, %c0_27] : memref<1x1xf32, #tpu.memory_space<vmem>>, vector<1x1xf32>
      tpu.vector_store %arg3[%c0_26, %c0_27], %63 {strides = array<i32>} : memref<1x1xf32, #tpu.memory_space<vmem>>, vector<1x1xf32>,
    } else {
    }
    return
  }
  func.func @transform_0(%arg0: i32) -> (i32, i32) {
    %c0_i32 = arith.constant 0 : i32
    %c0_i32_0 = arith.constant 0 : i32
    return %c0_i32, %arg0 : i32, i32
  }
  func.func @transform_1(%arg0: i32) -> (i32, i32) {
    %c0_i32 = arith.constant 0 : i32
    %c0_i32_0 = arith.constant 0 : i32
    return %c0_i32, %arg0 : i32, i32
  }
  func.func @transform_2(%arg0: i32) -> (i32, i32) {
    %c0_i32 = arith.constant 0 : i32
    %c0_i32_0 = arith.constant 0 : i32
    %c0_i32_1 = arith.constant 0 : i32
    return %c0_i32, %c0_i32_0 : i32, i32
  }
}

</mosaic_0001>

<bundles_post_ra>
// kernel: tpu_custom_call.1
= control target key start
LH: loop header
LB: loop body
LE: loop exit
PB: predicated region body
PF: predicated region fallthrough
CT: control target
= control target key end

     0   :  { %7 = vsyncpa [#allocation4], 0  ;;  %s209_s0 = inlined_call_operand.hbm [shape: f32[2,128], index: 0, kind: input, shape index: {}]   ;;  %s210_s1 = inlined_call_operand.vmem [shape: s32[1,128], index: 1, kind: input, shape index: {}]   ;;  %s211_s2 = inlined_call_operand.hbm [shape: f32[1,1], index: 2, kind: output, shape index: {}]  }
   0x1   :  { %8 = vsyncpa [#allocation5], 0  ;;  %s157_s9 = smov [#allocation3]   ;;  %s109_s13 = scalar_lea.hbm %s209_s0, 32 }
   0x2   :  { %s15_s10 = sshll.u32 %s157_s9, 4  ;;  %p110_p0 = scmp.ne.s32.totalorder %s209_s0, %s109_s13  ;;  %s16_s10 = int_to_ptr.vmem [resolvable:$true] %s15_s10 }
   0x3   :  { %p113_p1 = scmp.lt.u32.totalorder %s109_s13, %s209_s0 }
   0x5   :  { %p115_p2 = pnand %p113_p1, %p110_p0 }
   0x7   :  { %118 = shalt.err (!%p115_p2)
}
   0x8   :  { %s119_s18 = scalar_lea.vmem %s16_s10, 32  ;;  %p124_p4 = scmp.lt.s32.totalorder %s16_s10, %s16_s10 }
   0x9   :  { %p120_p3 = scmp.ne.s32.totalorder %s16_s10, %s119_s18  ;;  %p125_p5 = scmp.lt.s32.totalorder %s119_s18, %s119_s18 }
   0xb   :  { %p126_p6 = por %p125_p5, %p124_p4 }
   0xd   :  { %p127_p7 = pnand %p126_p6, %p120_p3 }
   0xf   :  { %130 = shalt.err (!%p127_p7)
}
  0x10   :  { %18 = dma.hbm_to_vmem [thread:$0]  %s209_s0, 32, %s16_s10, [#allocation4]  }
  0x11   :  { %153 = dma.done.wait [#allocation4], 32  }
  0x12   :  { %154 = vsyncadd [#allocation4], 4294967264  ;;  %vm28_vm0 = vcmask 0   ;;  %v158_v0 = vmov 0.0   ;;  %v30_v1 = vld [vmem:[%s210_s1] sm:$0x1]  ;;  %v61_v20 = vlaneseq }
  0x13   :  { %29 = vst.msk [vmem:[#allocation2] sm:$0x1] %vm28_vm0, %v158_v0  ;;  %v31_v2 = vld [vmem:[#allocation3] sm:$0x1]  ;;  %v38_v3 = vld [vmem:[#allocation3 + $0x1] sm:$0x1] }
  0x14   :  { %vm32_vm1 = vcmp.eq.s32.totalorder %v30_v1, 0  ;;  %v35_v4 = vmul.f32 30.0, %v31_v2  ;;  %vm39_vm2 = vcmp.eq.s32.totalorder %v30_v1, 1  ;;  %v42_v5 = vmul.f32 30.0, %v38_v3  ;;  %s159_s0 = smov [#allocation6]  }
  0x15   :  { %v98_v6 = vsel %vm32_vm1, 1.0, %v158_v0  ;;  %v99_v7 = vsel %vm39_vm2, 1.0, %v158_v0  ;;  %v62_v23 = vand.u32 127, %v61_v20  ;;  %vm69_vm4 = vcmask 1040384   ;;  %s89_s1 = sshll.u32 %s159_s0, 4  ;;  %s90_s1 = int_to_ptr.vmem [resolvable:$true] %s89_s1 }
  0x16   :  { %v36_v8 = vmul.f32 15.0, %v98_v6  ;;  %v43_v9 = vmul.f32 15.0, %v99_v7  ;;  %s131_s23 = scalar_lea.vmem %s90_s1, 16  ;;  %s135_s24 = scalar_lea.vmem %s90_s1, 32 }
  0x17   :  { %vm66_vm3 = vcmp.lt.s32.totalorder %v62_v23, 8  ;;  %p132_p8 = scmp.ne.s32.totalorder %s90_s1, %s131_s23  ;;  %p136_p9 = scmp.lt.s32.totalorder %s90_s1, %s90_s1 }
  0x18   :  { %v37_v10 = vsub.f32 %v35_v4, %v36_v8  ;;  %v44_v11 = vsub.f32 %v42_v5, %v43_v9  ;;  %p137_p10 = scmp.lt.s32.totalorder %s135_s24, %s131_s23 }
  0x1a   :  { %v45_v12 = vmax.f32 %v37_v10, %v44_v11  ;;  %v68_v30 = vld [vmem:[#allocation2] sm:$0x1]  ;;  %p138_p11 = por %p137_p10, %p136_p9 }
  0x1c   :  { %v46_v13 = vsub.f32 %v37_v10, %v45_v12  ;;  %v52_v14 = vsub.f32 %v44_v11, %v45_v12  ;;  %p139_p12 = pnand %p138_p11, %p132_p8 }
  0x1e   :  { %v47_v15 = vmul.f32 1.442695, %v46_v13  ;;  %v53_v16 = vmul.f32 1.442695, %v52_v14  ;;  %v50_v21 = vsel %vm32_vm1, %v46_v13, 0.0  ;;  %v56_v22 = vsel %vm39_vm2, %v52_v14, 0.0 }
  0x1f   :  { %v57_v24 = vadd.f32 %v56_v22, %v50_v21 }
  0x20   :  { %103 = vpow2.f32 %v47_v15 }
  0x21   :  { %105 = vpow2.f32 %v53_v16 }
  0x2a   :  { %v104_v17 = vpop.eup %103 }
  0x2b   :  { %v106_v18 = vpop.eup %105 }
  0x2c   :  { %v55_v19 = vadd.f32 %v106_v18, %v104_v17 }
  0x2e   :  { %107 = vlog2.f32 %v55_v19 }
  0x38   :  { %v108_v25 = vpop.eup %107 }
  0x39   :  { %v59_v26 = vmul.f32 0.6931472, %v108_v25 }
  0x3b   :  { %v60_v27 = vsub.f32 %v59_v26, %v57_v24 }
  0x3d   :  { %v67_v28 = vsel %vm66_vm3, %v60_v27, 0.0 }
  0x3e   :  { %v70_v29 = vsel %vm69_vm4, %v67_v28, 0.0 }
  0x3f   :  { %71 = vadd.xlane.f32.xlu0 %v70_v29 }
  0xcc   :  { %v72_v31 = vpop.xlane.xlu0 %71 }
  0xcd   :  { %v73_v32 = vadd.f32 %v72_v31, %v68_v30 }
  0xcf   :  { %75 = vst.msk [vmem:[#allocation2] sm:$0x1] %vm28_vm0, %v73_v32 }
  0xd6   :  { %v79_v33 = vld [vmem:[#allocation2] sm:$0x1] }
  0xd7   :  { %v81_v34 = vmul.f32 0.125, %v79_v33 }
  0xd9   :  { %82 = vst.msk [vmem:[#allocation6] sm:$0x1] %vm28_vm0, %v81_v34 }
  0xda   :  { %142 = shalt.err (!%p139_p12)
}
  0xdb   :  { %s143_s27 = scalar_lea.hbm %s211_s2, 16 }
  0xdc   :  { %p144_p13 = scmp.ne.s32.totalorder %s211_s2, %s143_s27  ;;  %p147_p0 = scmp.lt.u32.totalorder %s143_s27, %s211_s2 }
  0xde   :  { %p149_p1 = pnand %p147_p0, %p144_p13 }
  0xe0   :  { %152 = shalt.err (!%p149_p1)
}
  0xe1   :  { %92 = dma.vmem_to_hbm [thread:$0]  %s90_s1, 16, %s211_s2, [#allocation5]  }
  0xe2   :  { %155 = dma.done.wait [#allocation5], 16  }
  0xe3   :  { %156 = vsyncadd [#allocation5], 4294967280 }
  0xe4   :  { %96 = vsyncpa [#allocation4], 1 }
  0xe5   :  { %97 = vsyncpa [#allocation5], 1 }

</bundles_post_ra>
